<compile_context>
chip_gen: v6e
topology: v6e:2x2x1
jax: 0.10.0
libtpu: 0.0.40
codegen_flags: <defaults>
</compile_context>

<pallas_src>
import functools

import jax
import jax.numpy as jnp
import numpy as np
from jax import lax
from jax.experimental import pallas as pl
from jax.experimental.pallas import tpu as pltpu

BN_EPS = 1e-5


def _round_up(n, m):
    return ((n + m - 1) // m) * m


def _vitamin_kernel(out_pads, x_ref, *refs):
    """Fused folded-MLP forward for one batch tile.

    refs layout:
      refs[0 .. L-1] : W_l (bf16, padded [in_pad_l, out_pad_l], eval-BN pre-folded)
      refs[L]        : packed biases (f32, [L, max_out_pad])
      refs[L+1]      : out_ref (f32, [TB, out_pad_last])
    """
    n_layers = len(out_pads)
    w_refs = refs[:n_layers]
    b_ref = refs[n_layers]
    out_ref = refs[n_layers + 1]

    a = x_ref[...]                               # bf16 [TB, in_pad0]
    for l in range(n_layers):
        w = w_refs[l][...]                       # bf16 [in_pad_l, out_pad_l]
        # Read only this layer's bias row (static index/slice); avoids keeping
        # the whole bias pack live across the fully-unrolled layer loop.
        b = b_ref[l, : out_pads[l]]              # f32 [out_pad_l]
        h = jnp.dot(a, w, preferred_element_type=jnp.float32) + b
        if l < n_layers - 1:
            a = jnp.maximum(h, 0.0).astype(jnp.bfloat16)   # ReLU -> bf16 MXU operand
        else:
            a = h                                 # final Linear: no activation
    out_ref[...] = a.astype(out_ref.dtype)


def _fold_bn_into_next_layer(params):
    """Fold eval-mode BN affine of hidden layer l into layer l+1's weight/bias."""
    hidden_params, (w_out, b_out) = params
    ws, bs = [], []
    scale, shift = None, None
    for p in hidden_params:
        w, b = p["w"], p["b"]                           # [in,out], [1,out]
        if scale is not None:
            b = b + shift[None, :] @ w                  # uses un-scaled w
            w = scale[:, None] * w
        ws.append(w)
        bs.append(b)
        inv_std = lax.rsqrt(p["var"][0] + BN_EPS)       # [out]
        scale = p["gamma"][0] * inv_std
        shift = p["beta"][0] - p["mean"][0] * scale
    if scale is None:                                   # no hidden layers
        ws.append(w_out)
        bs.append(b_out)
    else:                                               # fold last BN into final Linear
        ws.append(scale[:, None] * w_out)
        bs.append(b_out + shift[None, :] @ w_out)
    return ws, bs


def _vmem_budget_bytes():
    """~85% of this generation's per-core VMEM (v5e/v6e: 128 MiB, v7x: 64 MiB)."""
    try:
        cap = int(pltpu.get_tpu_info().vmem_capacity_bytes)
    except Exception:
        cap = 64 << 20  # conservative fallback (v7x-sized)
    return max(32 << 20, int(cap * 0.85))


def _pick_batch_tile(batch, in_pad0, out_pad_last, max_out, param_bytes, vmem_budget):
    """Largest batch tile whose working set fits the VMEM budget, preferring
    >=2 grid tiles so ("parallel",) can shard across v7x's two TensorCores."""

    def fits(tb):
        stream = 2 * tb * in_pad0 * 2 + 2 * tb * out_pad_last * 4   # 2x-buffered x/out
        act = 3 * tb * max_out * 4                                   # live f32 activations
        return param_bytes + stream + act + (4 << 20) <= vmem_budget

    b_pad = _round_up(max(batch, 1), 128)
    for tb in (512, 256):
        if tb <= b_pad and (b_pad // tb) >= 2 and fits(tb):
            return tb
    return 128


def vitamin_net_forward(x, params):
    """Eval-mode VitaminNet forward via one fused pallas_call."""
    num_classes = params[1][0].shape[1]
    ws, bs = _fold_bn_into_next_layer(params)
    n_layers = len(ws)

    # --- feature-dim padding --------------------------------------------------
    in_dims = [w.shape[0] for w in ws]
    out_dims = [w.shape[1] for w in ws]
    out_pads = [_round_up(d, 128) for d in out_dims]
    # First-layer K: keep sub-128 inputs (nearly) unpadded — block dim == full
    # array dim is legal — so streamed x bytes aren't inflated by zero padding.
    k0 = in_dims[0]
    if k0 % 128 == 0:
        in_pad0 = k0
    elif k0 < 128:
        in_pad0 = _round_up(k0, 8)
    else:
        in_pad0 = _round_up(k0, 128)
    in_pads = [in_pad0] + out_pads[:-1]
    max_out = max(out_pads)

    ws_pad = []
    for l, w in enumerate(ws):
        wp = jnp.pad(w, ((0, in_pads[l] - w.shape[0]),
                         (0, out_pads[l] - w.shape[1])))
        ws_pad.append(wp.astype(jnp.bfloat16))

    # Pack all biases into one [n_layers, max_out] f32 array (single DMA/tile).
    b_rows = [jnp.pad(b, ((0, 0), (0, max_out - b.shape[1]))) for b in bs]
    b_pack = jnp.concatenate(b_rows, axis=0).astype(jnp.float32)

    # --- VMEM budget & batch tile ----------------------------------------------
    param_bytes = sum(int(np.prod(w.shape)) * 2 for w in ws_pad) + int(b_pack.size) * 4
    vmem_budget = _vmem_budget_bytes()
    B = x.shape[0]
    TB = _pick_batch_tile(B, in_pad0, out_pads[-1], max_out, param_bytes, vmem_budget)
    B_pad = _round_up(B, TB)

    # Stream activations in bf16: halves the dominant per-step HBM->VMEM bytes.
    x_pad = jnp.pad(x, ((0, B_pad - B), (0, in_pad0 - x.shape[1]))).astype(jnp.bfloat16)

    kernel = functools.partial(_vitamin_kernel, tuple(out_pads))
    out_shape = jax.ShapeDtypeStruct((B_pad, out_pads[-1]), jnp.float32)
    grid = (B_pad // TB,)

    def run(single_buffer_params):
        # Resident parameters (block index never changes) are single-buffered so
        # they don't cost 2x their bytes in VMEM; the x/out tiles keep default
        # double-buffering for pipelining.
        pm = {"pipeline_mode": pl.Buffered(1)} if single_buffer_params else {}
        in_specs = [pl.BlockSpec((TB, in_pad0), lambda i: (i, 0))]
        for w in ws_pad:
            in_specs.append(pl.BlockSpec(w.shape, lambda i: (0, 0), **pm))
        in_specs.append(pl.BlockSpec(b_pack.shape, lambda i: (0, 0), **pm))
        out_spec = pl.BlockSpec((TB, out_pads[-1]), lambda i: (i, 0))
        return pl.pallas_call(
            kernel,
            out_shape=out_shape,
            grid=grid,
            in_specs=in_specs,
            out_specs=out_spec,
            compiler_params=pltpu.CompilerParams(
                dimension_semantics=("parallel",),
                vmem_limit_bytes=vmem_budget,
            ),
        )(x_pad, *ws_pad, b_pack)

    try:
        out_pad_arr = run(single_buffer_params=True)
    except Exception:
        # Fallback if this jax version rejects Buffered(1): default buffering
        # only costs extra VMEM for resident params, never correctness.
        out_pad_arr = run(single_buffer_params=False)

    return out_pad_arr[:B, :num_classes]


def make_params(key, input_size, hidden_sizes, num_classes):
    """Deterministic synthetic parameters (shapes mirror the nn.Module)."""
    hidden_params = []
    sizes = [input_size] + list(hidden_sizes)
    for i in range(len(hidden_sizes)):
        key, kw, kb, kg, kbe, km, kv = jax.random.split(key, 7)
        fan_in, fan_out = sizes[i], sizes[i + 1]
        bound = 1.0 / np.sqrt(fan_in)
        hidden_params.append(
            dict(
                w=jax.random.uniform(kw, (fan_in, fan_out), jnp.float32, -bound, bound),
                b=jax.random.uniform(kb, (1, fan_out), jnp.float32, -bound, bound),
                gamma=1.0 + 0.1 * jax.random.normal(kg, (1, fan_out), jnp.float32),
                beta=0.1 * jax.random.normal(kbe, (1, fan_out), jnp.float32),
                mean=0.1 * jax.random.normal(km, (1, fan_out), jnp.float32),
                var=1.0 + 0.1 * jax.random.uniform(kv, (1, fan_out), jnp.float32),
            )
        )
    key, kw, kb = jax.random.split(key, 3)
    fan_in = hidden_sizes[-1]
    bound = 1.0 / np.sqrt(fan_in)
    w_out = jax.random.uniform(kw, (fan_in, num_classes), jnp.float32, -bound, bound)
    b_out = jax.random.uniform(kb, (1, num_classes), jnp.float32, -bound, bound)
    return hidden_params, (w_out, b_out)


def reference_forward(x, params):
    """Pure-JAX f32 reference (same eval-mode semantics, unfolded)."""
    hidden_params, (w_out, b_out) = params
    h = x
    for p in hidden_params:
        h = jnp.maximum(h @ p["w"] + p["b"], 0.0)
        h = (h - p["mean"]) * lax.rsqrt(p["var"] + BN_EPS) * p["gamma"] + p["beta"]
    return h @ w_out + b_out


if __name__ == "__main__":
    batch = 8
    input_size = 32
    hidden_sizes = [64, 32]
    num_classes = 8

    x = jax.random.normal(jax.random.PRNGKey(0), (batch, input_size), jnp.float32)
    params = make_params(jax.random.PRNGKey(42), input_size, hidden_sizes, num_classes)

    out = vitamin_net_forward(x, params)
    out = jax.block_until_ready(out)

    ref = reference_forward(x, params)
    # Tolerance accounts for bf16 matmul operands (f32 accumulation) + BN folding.
    np.testing.assert_allclose(np.asarray(out), np.asarray(ref), rtol=3e-2, atol=3e-2)

    print("KERNEL_OK")
</pallas_src>

<mosaic_0001>
module attributes {stable_mosaic.version = 11 : i64} {
  func.func @_vitamin_kernel(%arg0: i32, %arg1: memref<128x32xbf16, #tpu.memory_space<vmem>>, %arg2: memref<32x128xbf16, #tpu.memory_space<vmem>>, %arg3: memref<128x128xbf16, #tpu.memory_space<vmem>>, %arg4: memref<128x128xbf16, #tpu.memory_space<vmem>>, %arg5: memref<3x128xf32, #tpu.memory_space<vmem>>, %arg6: memref<128x128xf32, #tpu.memory_space<vmem>>) attributes {dimension_semantics = [#tpu.dimension_semantics<parallel>], iteration_bounds = array<i64: 1>, scalar_prefetch = 0 : i64, scratch_operands = 0 : i64, tpu.core_type = #tpu.core_type<tc>, window_params = [{transform_indices = @transform_0, window_bounds = array<i64: 128, 32>}, {pipeline_mode = #tpu.pipeline_mode<synchronous>, transform_indices = @transform_1, window_bounds = array<i64: 32, 128>}, {pipeline_mode = #tpu.pipeline_mode<synchronous>, transform_indices = @transform_2, window_bounds = array<i64: 128, 128>}, {pipeline_mode = #tpu.pipeline_mode<synchronous>, transform_indices = @transform_3, window_bounds = array<i64: 128, 128>}, {pipeline_mode = #tpu.pipeline_mode<synchronous>, transform_indices = @transform_4, window_bounds = array<i64: 3, 128>}, {transform_indices = @transform_5, window_bounds = array<i64: 128, 128>}]} {
    %c0 = arith.constant 0 : index
    %c0_0 = arith.constant 0 : index
    %0 = vector.load %arg1[%c0, %c0_0] : memref<128x32xbf16, #tpu.memory_space<vmem>>, vector<128x32xbf16>
    %c0_1 = arith.constant 0 : index
    %c0_2 = arith.constant 0 : index
    %1 = vector.load %arg2[%c0_1, %c0_2] : memref<32x128xbf16, #tpu.memory_space<vmem>>, vector<32x128xbf16>
    %c0_3 = arith.constant 0 : index
    %c0_4 = arith.constant 0 : index
    %2 = vector.load %arg5[%c0_3, %c0_4] : memref<3x128xf32, #tpu.memory_space<vmem>>, vector<1x128xf32>
    %3 = vector.shape_cast %2 : vector<1x128xf32> to vector<128xf32>
    %cst = arith.constant dense<0.000000e+00> : vector<128x128xf32>
    %4 = tpu.matmul %0, %1, %cst {dimension_numbers = #tpu.dot_dimension_numbers<[1], [0], [0], [1], [0, 0, 1, 1], [], []>} : vector<128x32xbf16>, vector<32x128xbf16>, vector<128x128xf32> -> vector<128x128xf32>
    %5 = vector.shape_cast %3 : vector<128xf32> to vector<1x128xf32>
    %6 = vector.broadcast %5 : vector<1x128xf32> to vector<128x128xf32>
    %7 = arith.addf %4, %6 : vector<128x128xf32>
    %cst_5 = arith.constant 0.000000e+00 : f32
    %8 = vector.broadcast %cst_5 : f32 to vector<128x128xf32>
    %9 = arith.maximumf %7, %8 : vector<128x128xf32>
    %10 = arith.truncf %9 : vector<128x128xf32> to vector<128x128xbf16>
    %c0_6 = arith.constant 0 : index
    %c0_7 = arith.constant 0 : index
    %11 = vector.load %arg3[%c0_6, %c0_7] : memref<128x128xbf16, #tpu.memory_space<vmem>>, vector<128x128xbf16>
    %c1 = arith.constant 1 : index
    %c0_8 = arith.constant 0 : index
    %12 = vector.load %arg5[%c1, %c0_8] : memref<3x128xf32, #tpu.memory_space<vmem>>, vector<1x128xf32>
    %13 = vector.shape_cast %12 : vector<1x128xf32> to vector<128xf32>
    %cst_9 = arith.constant dense<0.000000e+00> : vector<128x128xf32>
    %14 = tpu.matmul %10, %11, %cst_9 {dimension_numbers = #tpu.dot_dimension_numbers<[1], [0], [0], [1], [0, 0, 1, 1], [], []>} : vector<128x128xbf16>, vector<128x128xbf16>, vector<128x128xf32> -> vector<128x128xf32>
    %15 = vector.shape_cast %13 : vector<128xf32> to vector<1x128xf32>
    %16 = vector.broadcast %15 : vector<1x128xf32> to vector<128x128xf32>
    %17 = arith.addf %14, %16 : vector<128x128xf32>
    %cst_10 = arith.constant 0.000000e+00 : f32
    %18 = vector.broadcast %cst_10 : f32 to vector<128x128xf32>
    %19 = arith.maximumf %17, %18 : vector<128x128xf32>
    %20 = arith.truncf %19 : vector<128x128xf32> to vector<128x128xbf16>
    %c0_11 = arith.constant 0 : index
    %c0_12 = arith.constant 0 : index
    %21 = vector.load %arg4[%c0_11, %c0_12] : memref<128x128xbf16, #tpu.memory_space<vmem>>, vector<128x128xbf16>
    %c2 = arith.constant 2 : index
    %c0_13 = arith.constant 0 : index
    %22 = vector.load %arg5[%c2, %c0_13] : memref<3x128xf32, #tpu.memory_space<vmem>>, vector<1x128xf32>
    %23 = vector.shape_cast %22 : vector<1x128xf32> to vector<128xf32>
    %cst_14 = arith.constant dense<0.000000e+00> : vector<128x128xf32>
    %24 = tpu.matmul %20, %21, %cst_14 {dimension_numbers = #tpu.dot_dimension_numbers<[1], [0], [0], [1], [0, 0, 1, 1], [], []>} : vector<128x128xbf16>, vector<128x128xbf16>, vector<128x128xf32> -> vector<128x128xf32>
    %25 = vector.shape_cast %23 : vector<128xf32> to vector<1x128xf32>
    %26 = vector.broadcast %25 : vector<1x128xf32> to vector<128x128xf32>
    %27 = arith.addf %24, %26 : vector<128x128xf32>
    %c0_15 = arith.constant 0 : index
    %c0_16 = arith.constant 0 : index
    %28 = vector.load %arg6[%c0_15, %c0_16] : memref<128x128xf32, #tpu.memory_space<vmem>>, vector<128x128xf32>
    tpu.vector_store %arg6[%c0_15, %c0_16], %27 {strides = array<i32>} : memref<128x128xf32, #tpu.memory_space<vmem>>, vector<128x128xf32>,
    return
  }
  func.func @transform_0(%arg0: i32) -> (i32, i32) {
    %c0_i32 = arith.constant 0 : i32
    %c0_i32_0 = arith.constant 0 : i32
    return %arg0, %c0_i32 : i32, i32
  }
  func.func @transform_1(%arg0: i32) -> (i32, i32) {
    %c0_i32 = arith.constant 0 : i32
    %c0_i32_0 = arith.constant 0 : i32
    %c0_i32_1 = arith.constant 0 : i32
    return %c0_i32, %c0_i32_0 : i32, i32
  }
  func.func @transform_2(%arg0: i32) -> (i32, i32) {
    %c0_i32 = arith.constant 0 : i32
    %c0_i32_0 = arith.constant 0 : i32
    %c0_i32_1 = arith.constant 0 : i32
    return %c0_i32, %c0_i32_0 : i32, i32
  }
  func.func @transform_3(%arg0: i32) -> (i32, i32) {
    %c0_i32 = arith.constant 0 : i32
    %c0_i32_0 = arith.constant 0 : i32
    %c0_i32_1 = arith.constant 0 : i32
    return %c0_i32, %c0_i32_0 : i32, i32
  }
  func.func @transform_4(%arg0: i32) -> (i32, i32) {
    %c0_i32 = arith.constant 0 : i32
    %c0_i32_0 = arith.constant 0 : i32
    %c0_i32_1 = arith.constant 0 : i32
    return %c0_i32, %c0_i32_0 : i32, i32
  }
  func.func @transform_5(%arg0: i32) -> (i32, i32) {
    %c0_i32 = arith.constant 0 : i32
    %c0_i32_0 = arith.constant 0 : i32
    return %arg0, %c0_i32 : i32, i32
  }
}

module attributes {stable_mosaic.version = 11 : i64} {
  func.func @_vitamin_kernel(%arg0: i32, %arg1: memref<128x32xbf16, #tpu.memory_space<vmem>>, %arg2: memref<32x128xbf16, #tpu.memory_space<vmem>>, %arg3: memref<128x128xbf16, #tpu.memory_space<vmem>>, %arg4: memref<128x128xbf16, #tpu.memory_space<vmem>>, %arg5: memref<3x128xf32, #tpu.memory_space<vmem>>, %arg6: memref<128x128xf32, #tpu.memory_space<vmem>>) attributes {dimension_semantics = [#tpu.dimension_semantics<parallel>], iteration_bounds = array<i64: 1>, scalar_prefetch = 0 : i64, scratch_operands = 0 : i64, tpu.core_type = #tpu.core_type<tc>, window_params = [{transform_indices = @transform_0, window_bounds = array<i64: 128, 32>}, {pipeline_mode = #tpu.pipeline_mode<synchronous>, transform_indices = @transform_1, window_bounds = array<i64: 32, 128>}, {pipeline_mode = #tpu.pipeline_mode<synchronous>, transform_indices = @transform_2, window_bounds = array<i64: 128, 128>}, {pipeline_mode = #tpu.pipeline_mode<synchronous>, transform_indices = @transform_3, window_bounds = array<i64: 128, 128>}, {pipeline_mode = #tpu.pipeline_mode<synchronous>, transform_indices = @transform_4, window_bounds = array<i64: 3, 128>}, {transform_indices = @transform_5, window_bounds = array<i64: 128, 128>}]} {
    %c0 = arith.constant 0 : index
    %c0_0 = arith.constant 0 : index
    %0 = vector.load %arg1[%c0, %c0_0] : memref<128x32xbf16, #tpu.memory_space<vmem>>, vector<128x32xbf16>
    %c0_1 = arith.constant 0 : index
    %c0_2 = arith.constant 0 : index
    %1 = vector.load %arg2[%c0_1, %c0_2] : memref<32x128xbf16, #tpu.memory_space<vmem>>, vector<32x128xbf16>
    %c0_3 = arith.constant 0 : index
    %c0_4 = arith.constant 0 : index
    %2 = vector.load %arg5[%c0_3, %c0_4] : memref<3x128xf32, #tpu.memory_space<vmem>>, vector<1x128xf32>
    %3 = vector.shape_cast %2 : vector<1x128xf32> to vector<128xf32>
    %cst = arith.constant dense<0.000000e+00> : vector<128x128xf32>
    %4 = tpu.matmul %0, %1, %cst {dimension_numbers = #tpu.dot_dimension_numbers<[1], [0], [0], [1], [0, 0, 1, 1], [], []>} : vector<128x32xbf16>, vector<32x128xbf16>, vector<128x128xf32> -> vector<128x128xf32>
    %5 = vector.shape_cast %3 : vector<128xf32> to vector<1x128xf32>
    %6 = vector.broadcast %5 : vector<1x128xf32> to vector<128x128xf32>
    %7 = arith.addf %4, %6 : vector<128x128xf32>
    %cst_5 = arith.constant 0.000000e+00 : f32
    %8 = vector.broadcast %cst_5 : f32 to vector<128x128xf32>
    %9 = arith.maximumf %7, %8 : vector<128x128xf32>
    %10 = arith.truncf %9 : vector<128x128xf32> to vector<128x128xbf16>
    %c0_6 = arith.constant 0 : index
    %c0_7 = arith.constant 0 : index
    %11 = vector.load %arg3[%c0_6, %c0_7] : memref<128x128xbf16, #tpu.memory_space<vmem>>, vector<128x128xbf16>
    %c1 = arith.constant 1 : index
    %c0_8 = arith.constant 0 : index
    %12 = vector.load %arg5[%c1, %c0_8] : memref<3x128xf32, #tpu.memory_space<vmem>>, vector<1x128xf32>
    %13 = vector.shape_cast %12 : vector<1x128xf32> to vector<128xf32>
    %cst_9 = arith.constant dense<0.000000e+00> : vector<128x128xf32>
    %14 = tpu.matmul %10, %11, %cst_9 {dimension_numbers = #tpu.dot_dimension_numbers<[1], [0], [0], [1], [0, 0, 1, 1], [], []>} : vector<128x128xbf16>, vector<128x128xbf16>, vector<128x128xf32> -> vector<128x128xf32>
    %15 = vector.shape_cast %13 : vector<128xf32> to vector<1x128xf32>
    %16 = vector.broadcast %15 : vector<1x128xf32> to vector<128x128xf32>
    %17 = arith.addf %14, %16 : vector<128x128xf32>
    %cst_10 = arith.constant 0.000000e+00 : f32
    %18 = vector.broadcast %cst_10 : f32 to vector<128x128xf32>
    %19 = arith.maximumf %17, %18 : vector<128x128xf32>
    %20 = arith.truncf %19 : vector<128x128xf32> to vector<128x128xbf16>
    %c0_11 = arith.constant 0 : index
    %c0_12 = arith.constant 0 : index
    %21 = vector.load %arg4[%c0_11, %c0_12] : memref<128x128xbf16, #tpu.memory_space<vmem>>, vector<128x128xbf16>
    %c2 = arith.constant 2 : index
    %c0_13 = arith.constant 0 : index
    %22 = vector.load %arg5[%c2, %c0_13] : memref<3x128xf32, #tpu.memory_space<vmem>>, vector<1x128xf32>
    %23 = vector.shape_cast %22 : vector<1x128xf32> to vector<128xf32>
    %cst_14 = arith.constant dense<0.000000e+00> : vector<128x128xf32>
    %24 = tpu.matmul %20, %21, %cst_14 {dimension_numbers = #tpu.dot_dimension_numbers<[1], [0], [0], [1], [0, 0, 1, 1], [], []>} : vector<128x128xbf16>, vector<128x128xbf16>, vector<128x128xf32> -> vector<128x128xf32>
    %25 = vector.shape_cast %23 : vector<128xf32> to vector<1x128xf32>
    %26 = vector.broadcast %25 : vector<1x128xf32> to vector<128x128xf32>
    %27 = arith.addf %24, %26 : vector<128x128xf32>
    %c0_15 = arith.constant 0 : index
    %c0_16 = arith.constant 0 : index
    %28 = vector.load %arg6[%c0_15, %c0_16] : memref<128x128xf32, #tpu.memory_space<vmem>>, vector<128x128xf32>
    tpu.vector_store %arg6[%c0_15, %c0_16], %27 {strides = array<i32>} : memref<128x128xf32, #tpu.memory_space<vmem>>, vector<128x128xf32>,
    return
  }
  func.func @transform_0(%arg0: i32) -> (i32, i32) {
    %c0_i32 = arith.constant 0 : i32
    %c0_i32_0 = arith.constant 0 : i32
    return %arg0, %c0_i32 : i32, i32
  }
  func.func @transform_1(%arg0: i32) -> (i32, i32) {
    %c0_i32 = arith.constant 0 : i32
    %c0_i32_0 = arith.constant 0 : i32
    %c0_i32_1 = arith.constant 0 : i32
    return %c0_i32, %c0_i32_0 : i32, i32
  }
  func.func @transform_2(%arg0: i32) -> (i32, i32) {
    %c0_i32 = arith.constant 0 : i32
    %c0_i32_0 = arith.constant 0 : i32
    %c0_i32_1 = arith.constant 0 : i32
    return %c0_i32, %c0_i32_0 : i32, i32
  }
  func.func @transform_3(%arg0: i32) -> (i32, i32) {
    %c0_i32 = arith.constant 0 : i32
    %c0_i32_0 = arith.constant 0 : i32
    %c0_i32_1 = arith.constant 0 : i32
    return %c0_i32, %c0_i32_0 : i32, i32
  }
  func.func @transform_4(%arg0: i32) -> (i32, i32) {
    %c0_i32 = arith.constant 0 : i32
    %c0_i32_0 = arith.constant 0 : i32
    %c0_i32_1 = arith.constant 0 : i32
    return %c0_i32, %c0_i32_0 : i32, i32
  }
  func.func @transform_5(%arg0: i32) -> (i32, i32) {
    %c0_i32 = arith.constant 0 : i32
    %c0_i32_0 = arith.constant 0 : i32
    return %arg0, %c0_i32 : i32, i32
  }
}

</mosaic_0001>

<bundles_post_ra>
// kernel: tpu_custom_call.1
= control target key start
LH: loop header
LB: loop body
LE: loop exit
PB: predicated region body
PF: predicated region fallthrough
CT: control target
= control target key end

     0   :  { %10 = vsyncpa [#allocation3], 0  ;;  %s1000_s0 = inlined_call_operand.vmem [shape: bf16[128,32], index: 0, kind: input, shape index: {}]   ;;  %s1001_s1 = inlined_call_operand.vmem [shape: bf16[32,128], index: 1, kind: input, shape index: {}]   ;;  %s1002_s2 = inlined_call_operand.vmem [shape: bf16[128,128], index: 2, kind: input, shape index: {}]   ;;  %s1003_s3 = inlined_call_operand.hbm [shape: bf16[128,128], index: 3, kind: input, shape index: {}]   ;;  %s1004_s4 = inlined_call_operand.vmem [shape: f32[3,128], index: 4, kind: input, shape index: {}]   ;;  %s1005_s5 = inlined_call_operand.hbm [shape: f32[128,128], index: 5, kind: output, shape index: {}]  }
   0x1   :  { %11 = vsyncpa [#allocation4], 0  ;;  %s887_s18 = smov [#allocation2]  }
   0x2   :  { %s23_s19 = sshll.u32 %s887_s18, 4  ;;  %s24_s19 = int_to_ptr.vmem [resolvable:$true] %s23_s19 }
   0x3   :  { %s851_s20 = scalar_lea.vmem %s24_s19, 1024  ;;  %p856_p1 = scmp.lt.s32.totalorder %s24_s19, %s24_s19 }
   0x4   :  { %p852_p0 = scmp.ne.s32.totalorder %s24_s19, %s851_s20  ;;  %p857_p2 = scmp.lt.s32.totalorder %s851_s20, %s851_s20 }
   0x6   :  { %p858_p3 = por %p857_p2, %p856_p1 }
   0x8   :  { %p859_p4 = pnand %p858_p3, %p852_p0 }
   0xa   :  { %862 = shalt.err (!%p859_p4)
}
   0xb   :  { %s888_s21 = smov 64   ;;  %s889_s22 = smov 4  }
   0xc   :  { %29 = dma.hbm_to_vmem [thread:$0]  %s1003_s3, 1024, %s24_s19, [#allocation3], %s888_s21, %s888_s21, %s889_s22  }
   0xd   :  { %883 = dma.done.wait [#allocation3], 1024  }
   0xe   :  { %884 = vsyncadd [#allocation3], 4294966272  ;;  %v817_v0 = vld [vmem:[%s1001_s1 + $0x8] sm:$0xff]   ;;  %v818_v1 = vld [vmem:[%s1001_s1] sm:$0xff]   ;;  %vm113_vm0 = vcmask 261120  }
   0xf   :  { %727 = vmatprep.subr.bf16.mxu0 %v817_v0  ;;  %v819_v2 = vld [vmem:[%s1000_s0] sm:$0xff]   ;;  %v820_v3 = vld [vmem:[%s1000_s0 + $0x8] sm:$0xff]   ;;  %v821_v4 = vld [vmem:[%s1000_s0 + $0x10] sm:$0xff]  }
  0x10   :  { %728 = vmatpush3.bf16.msra.mxu0 %v817_v0  ;;  %731 = vmatprep.mubr.msk.bf16.mxu0 %vm113_vm0, %v819_v2  ;;  %v827_v5 = vld [vmem:[%s1002_s2 + $0x38] sm:$0xff]   ;;  %v828_v6 = vld [vmem:[%s1002_s2 + $0x30] sm:$0xff]   ;;  %v823_v8 = vld [vmem:[%s1000_s0 + $0x20] sm:$0xff]  }
  0x11   :  { %729 = vmatprep.subr.bf16.mxu0 %v818_v1  ;;  %v822_v7 = vld [vmem:[%s1000_s0 + $0x18] sm:$0xff]   ;;  %747 = vmatprep.subr.bf16.mxu1 %v827_v5  ;;  %v829_v9 = vld [vmem:[%s1002_s2 + $0x28] sm:$0xff]   ;;  %v830_v10 = vld [vmem:[%s1002_s2 + $0x20] sm:$0xff]  }
  0x12   :  { %748 = vmatpush3.bf16.msra.mxu1 %v827_v5  ;;  %v824_v11 = vld [vmem:[%s1000_s0 + $0x28] sm:$0xff]   ;;  %v831_v12 = vld [vmem:[%s1002_s2 + $0x18] sm:$0xff]   ;;  %v825_v13 = vld [vmem:[%s1000_s0 + $0x30] sm:$0xff]  }
  0x13   :  { %749 = vmatprep.subr.bf16.mxu1 %v828_v6  ;;  %v826_v14 = vld [vmem:[%s1000_s0 + $0x38] sm:$0xff]   ;;  %v832_v15 = vld [vmem:[%s1002_s2 + $0x10] sm:$0xff]   ;;  %v833_v16 = vld [vmem:[%s1002_s2 + $0x8] sm:$0xff]  }
  0x14   :  { %730 = vmatpush3.bf16.msra.mxu0 %v818_v1  ;;  %v834_v17 = vld [vmem:[%s1002_s2] sm:$0xff]   ;;  %v835_v18 = vld [vmem:[#allocation2 + $0x38] sm:$0xff]   ;;  %v836_v19 = vld [vmem:[#allocation2 + $0x30] sm:$0xff]  }
  0x15   :  { %779 = vmatprep.subr.bf16.mxu0 %v835_v18  ;;  %v837_v20 = vld [vmem:[#allocation2 + $0x28] sm:$0xff]   ;;  %v838_v21 = vld [vmem:[#allocation2 + $0x20] sm:$0xff]   ;;  %v839_v22 = vld [vmem:[#allocation2 + $0x18] sm:$0xff]  }
  0x16   :  { %750 = vmatpush3.bf16.msra.mxu1 %v828_v6  ;;  %v648_v25 = vld [vmem:[%s1004_s4] ss:$0 sm:$0xff] }
  0x17   :  { %732 = vmatmul.mubr.msk.bf16.vlgmr.msra.gmra.mxu0 %vm113_vm0, %v820_v3  ;;  %751 = vmatprep.subr.bf16.mxu1 %v829_v9 }
  0x18   :  { %735 = vmatprep.mubr.msk.bf16.mxu0 %vm113_vm0, %v821_v4  ;;  %780 = vmatpush3.bf16.msra.mxu0 %v835_v18  ;;  %v842_v18 = vld [vmem:[#allocation2] sm:$0xff]  }
  0x19   :  { %781 = vmatprep.subr.bf16.mxu0 %v836_v19 }
  0x1a   :  { %752 = vmatpush3.bf16.msra.mxu1 %v829_v9 }
  0x1b   :  { %753 = vmatprep.subr.bf16.mxu1 %v830_v10 }
  0x1c   :  { %782 = vmatpush3.bf16.msra.mxu0 %v836_v19 }
  0x1d   :  { %783 = vmatprep.subr.bf16.mxu0 %v837_v20 }
  0x1e   :  { %754 = vmatpush3.bf16.msra.mxu1 %v830_v10 }
  0x1f   :  { %736 = vmatmul.mubr.msk.bf16.gmra.mxu0 %vm113_vm0, %v822_v7  ;;  %755 = vmatprep.subr.bf16.mxu1 %v831_v12 }
  0x20   :  { %739 = vmatprep.mubr.msk.bf16.mxu0 %vm113_vm0, %v823_v8  ;;  %784 = vmatpush3.bf16.msra.mxu0 %v837_v20 }
  0x21   :  { %785 = vmatprep.subr.bf16.mxu0 %v838_v21 }
  0x22   :  { %756 = vmatpush3.bf16.msra.mxu1 %v831_v12 }
  0x23   :  { %757 = vmatprep.subr.bf16.mxu1 %v832_v15 }
  0x24   :  { %786 = vmatpush3.bf16.msra.mxu0 %v838_v21  ;;  %v667_v21 = vld [vmem:[%s1004_s4 + $0x1] ss:$0 sm:$0xff] }
  0x25   :  { %787 = vmatprep.subr.bf16.mxu0 %v839_v22 }
  0x26   :  { %758 = vmatpush3.bf16.msra.mxu1 %v832_v15 }
  0x27   :  { %740 = vmatmul.mubr.msk.bf16.gmra.mxu0 %vm113_vm0, %v824_v11  ;;  %759 = vmatprep.subr.bf16.mxu1 %v833_v16 }
  0x28   :  { %743 = vmatprep.mubr.msk.bf16.mxu0 %vm113_vm0, %v825_v13  ;;  %788 = vmatpush3.bf16.msra.mxu0 %v839_v22 }
  0x2a   :  { %760 = vmatpush3.bf16.msra.mxu1 %v833_v16  ;;  %v840_v16 = vld [vmem:[#allocation2 + $0x10] sm:$0xff]  }
  0x2b   :  { %761 = vmatprep.subr.bf16.mxu1 %v834_v17  ;;  %789 = vmatprep.subr.bf16.mxu0 %v840_v16 }
  0x2c   :  { %790 = vmatpush3.bf16.msra.mxu0 %v840_v16 }
  0x2e   :  { %762 = vmatpush3.bf16.msra.mxu1 %v834_v17  ;;  %v841_v17 = vld [vmem:[#allocation2 + $0x8] sm:$0xff]  }
  0x2f   :  { %744 = vmatmul.mubr.msk.bf16.gmra.mxu0 %vm113_vm0, %v826_v14  ;;  %791 = vmatprep.subr.bf16.mxu0 %v841_v17 }
  0x30   :  { %792 = vmatpush3.bf16.msra.mxu0 %v841_v17 }
  0x31   :  { %793 = vmatprep.subr.bf16.mxu0 %v842_v18 }
  0x34   :  { %794 = vmatpush3.bf16.msra.mxu0 %v842_v18 }
  0xd7   :  { %v733_v23 = vpop.f32.mrf.mxu0 }
  0xd8   :  { %v181_v29 = vadd.f32 %v733_v23, %v648_v25 }
  0xd9   :  { %v172_v24 = vpop.f32.mrf.mxu0 }
  0xda   :  { %v173_v27 = vadd.f32 %v648_v25, %v172_v24  ;;  %v237_v36 = vmax.f32 %v181_v29, 0.0 }
  0xdb   :  { %v734_v26 = vpop.f32.mrf.mxu0 }
  0xdc   :  { %v184_v28 = vadd.f32 %v734_v26, %v648_v25  ;;  %v235_v34 = vmax.f32 %v173_v27, 0.0 }
  0xdd   :  { %v175_v30 = vpop.f32.mrf.mxu0 }
  0xde   :  { %v176_v31 = vadd.f32 %v648_v25, %v175_v30  ;;  %v238_v32 = vmax.f32 %v184_v28, 0.0 }
  0xdf   :  { %v737_v33 = vpop.f32.mrf.mxu0 }
  0xe0   :  { %v236_v35 = vmax.f32 %v176_v31, 0.0  ;;  %v252_v39 = vpack.c.bf16 %v238_v32, %v237_v36  ;;  %v197_v43 = vadd.f32 %v737_v33, %v648_v25 }
  0xe1   :  { %v188_v37 = vpop.f32.mrf.mxu0 }
  0xe2   :  { %v251_v38 = vpack.c.bf16 %v236_v35, %v235_v34  ;;  %v189_v41 = vadd.f32 %v648_v25, %v188_v37  ;;  %v241_v50 = vmax.f32 %v197_v43, 0.0 }
  0xe3   :  { %v738_v40 = vpop.f32.mrf.mxu0 }
  0xe4   :  { %v200_v42 = vadd.f32 %v738_v40, %v648_v25  ;;  %763 = vmatprep.mubr.bf16.mxu1 %v251_v38  ;;  %v239_v48 = vmax.f32 %v189_v41, 0.0 }
  0xe5   :  { %v191_v44 = vpop.f32.mrf.mxu0  ;;  %764 = vmatmul.mubr.bf16.vlgmr.msra.gmra.mxu1 %v252_v39 }
  0xe6   :  { %v192_v45 = vadd.f32 %v648_v25, %v191_v44  ;;  %v242_v46 = vmax.f32 %v200_v42, 0.0 }
  0xe7   :  { %v741_v47 = vpop.f32.mrf.mxu0 }
  0xe8   :  { %v240_v49 = vmax.f32 %v192_v45, 0.0  ;;  %v254_v53 = vpack.c.bf16 %v242_v46, %v241_v50  ;;  %v213_v57 = vadd.f32 %v741_v47, %v648_v25 }
  0xe9   :  { %v204_v51 = vpop.f32.mrf.mxu0 }
  0xea   :  { %v253_v52 = vpack.c.bf16 %v240_v49, %v239_v48  ;;  %v205_v55 = vadd.f32 %v648_v25, %v204_v51  ;;  %v245_v0 = vmax.f32 %v213_v57, 0.0 }
  0xeb   :  { %v742_v54 = vpop.f32.mrf.mxu0 }
  0xec   :  { %v216_v56 = vadd.f32 %v742_v54, %v648_v25  ;;  %767 = vmatprep.mubr.bf16.mxu1 %v253_v52  ;;  %v243_v62 = vmax.f32 %v205_v55, 0.0 }
  0xed   :  { %v207_v58 = vpop.f32.mrf.mxu0  ;;  %768 = vmatmul.mubr.bf16.gmra.mxu1 %v254_v53 }
  0xee   :  { %v208_v59 = vadd.f32 %v648_v25, %v207_v58  ;;  %v246_v60 = vmax.f32 %v216_v56, 0.0 }
  0xef   :  { %v745_v61 = vpop.f32.mrf.mxu0 }
  0xf0   :  { %v244_v63 = vmax.f32 %v208_v59, 0.0  ;;  %v256_v3 = vpack.c.bf16 %v246_v60, %v245_v0  ;;  %v229_v7 = vadd.f32 %v745_v61, %v648_v25 }
  0xf1   :  { %v220_v1 = vpop.f32.mrf.mxu0 }
  0xf2   :  { %v255_v2 = vpack.c.bf16 %v244_v63, %v243_v62  ;;  %v221_v5 = vadd.f32 %v648_v25, %v220_v1  ;;  %v249_v13 = vmax.f32 %v229_v7, 0.0 }
  0xf3   :  { %v746_v4 = vpop.f32.mrf.mxu0 }
  0xf4   :  { %v232_v6 = vadd.f32 %v746_v4, %v648_v25  ;;  %771 = vmatprep.mubr.bf16.mxu1 %v255_v2  ;;  %v247_v11 = vmax.f32 %v221_v5, 0.0 }
  0xf5   :  { %v223_v8 = vpop.f32.mrf.mxu0  ;;  %772 = vmatmul.mubr.bf16.gmra.mxu1 %v256_v3 }
  0xf6   :  { %v224_v9 = vadd.f32 %v648_v25, %v223_v8  ;;  %v250_v10 = vmax.f32 %v232_v6, 0.0 }
  0xf8   :  { %v248_v12 = vmax.f32 %v224_v9, 0.0  ;;  %v258_v15 = vpack.c.bf16 %v250_v10, %v249_v13 }
  0xfa   :  { %v257_v14 = vpack.c.bf16 %v248_v12, %v247_v11  ;;  %v676_v12 = vld [vmem:[%s1004_s4 + $0x2] ss:$0 sm:$0xff]  ;;  %s890_s4 = smov [#allocation5]  }
  0xfb   :  { %s636_s11 = sshll.u32 %s890_s4, 4  ;;  %s637_s11 = int_to_ptr.vmem [resolvable:$true] %s636_s11 }
  0xfc   :  { %775 = vmatprep.mubr.bf16.mxu1 %v257_v14  ;;  %s863_s12 = scalar_lea.vmem %s637_s11, 2048  ;;  %p868_p6 = scmp.lt.s32.totalorder %s637_s11, %s637_s11 }
  0xfd   :  { %776 = vmatmul.mubr.bf16.gmra.mxu1 %v258_v15  ;;  %p864_p5 = scmp.ne.s32.totalorder %s637_s11, %s863_s12  ;;  %p869_p7 = scmp.lt.s32.totalorder %s863_s12, %s863_s12 }
  0xff   :  { %p870_p8 = por %p869_p7, %p868_p6 }
 0x101   :  { %p871_p9 = pnand %p870_p8, %p864_p5 }
 0x1a5   :  { %v765_v19 = vpop.f32.mrf.mxu1 }
 0x1a6   :  { %v371_v25 = vadd.f32 %v765_v19, %v667_v21 }
 0x1a7   :  { %v362_v20 = vpop.f32.mrf.mxu1 }
 0x1a8   :  { %v363_v23 = vadd.f32 %v667_v21, %v362_v20  ;;  %v427_v32 = vmax.f32 %v371_v25, 0.0 }
 0x1a9   :  { %v766_v22 = vpop.f32.mrf.mxu1 }
 0x1aa   :  { %v374_v24 = vadd.f32 %v766_v22, %v667_v21  ;;  %v425_v30 = vmax.f32 %v363_v23, 0.0 }
 0x1ab   :  { %v365_v26 = vpop.f32.mrf.mxu1 }
 0x1ac   :  { %v366_v27 = vadd.f32 %v667_v21, %v365_v26  ;;  %v428_v28 = vmax.f32 %v374_v24, 0.0 }
 0x1ad   :  { %v769_v29 = vpop.f32.mrf.mxu1 }
 0x1ae   :  { %v426_v31 = vmax.f32 %v366_v27, 0.0  ;;  %v442_v35 = vpack.c.bf16 %v428_v28, %v427_v32  ;;  %v387_v39 = vadd.f32 %v769_v29, %v667_v21 }
 0x1af   :  { %v378_v33 = vpop.f32.mrf.mxu1 }
 0x1b0   :  { %v441_v34 = vpack.c.bf16 %v426_v31, %v425_v30  ;;  %v379_v37 = vadd.f32 %v667_v21, %v378_v33  ;;  %v431_v46 = vmax.f32 %v387_v39, 0.0 }
 0x1b1   :  { %v770_v36 = vpop.f32.mrf.mxu1 }
 0x1b2   :  { %v390_v38 = vadd.f32 %v770_v36, %v667_v21  ;;  %795 = vmatprep.mubr.bf16.mxu0 %v441_v34  ;;  %v429_v44 = vmax.f32 %v379_v37, 0.0 }
 0x1b3   :  { %v381_v40 = vpop.f32.mrf.mxu1  ;;  %796 = vmatmul.mubr.bf16.vlgmr.msra.gmra.mxu0 %v442_v35 }
 0x1b4   :  { %v382_v41 = vadd.f32 %v667_v21, %v381_v40  ;;  %v432_v42 = vmax.f32 %v390_v38, 0.0 }
 0x1b5   :  { %v773_v43 = vpop.f32.mrf.mxu1 }
 0x1b6   :  { %v430_v45 = vmax.f32 %v382_v41, 0.0  ;;  %v444_v49 = vpack.c.bf16 %v432_v42, %v431_v46  ;;  %v403_v53 = vadd.f32 %v773_v43, %v667_v21 }
 0x1b7   :  { %v394_v47 = vpop.f32.mrf.mxu1 }
 0x1b8   :  { %v443_v48 = vpack.c.bf16 %v430_v45, %v429_v44  ;;  %v395_v51 = vadd.f32 %v667_v21, %v394_v47  ;;  %v435_v60 = vmax.f32 %v403_v53, 0.0 }
 0x1b9   :  { %v774_v50 = vpop.f32.mrf.mxu1 }
 0x1ba   :  { %v406_v52 = vadd.f32 %v774_v50, %v667_v21  ;;  %799 = vmatprep.mubr.bf16.mxu0 %v443_v48  ;;  %v433_v58 = vmax.f32 %v395_v51, 0.0 }
 0x1bb   :  { %v397_v54 = vpop.f32.mrf.mxu1  ;;  %800 = vmatmul.mubr.bf16.gmra.mxu0 %v444_v49 }
 0x1bc   :  { %v398_v55 = vadd.f32 %v667_v21, %v397_v54  ;;  %v436_v56 = vmax.f32 %v406_v52, 0.0 }
 0x1bd   :  { %v777_v57 = vpop.f32.mrf.mxu1 }
 0x1be   :  { %v434_v59 = vmax.f32 %v398_v55, 0.0  ;;  %v446_v63 = vpack.c.bf16 %v436_v56, %v435_v60  ;;  %v419_v3 = vadd.f32 %v777_v57, %v667_v21 }
 0x1bf   :  { %v410_v61 = vpop.f32.mrf.mxu1 }
 0x1c0   :  { %v445_v62 = vpack.c.bf16 %v434_v59, %v433_v58  ;;  %v411_v1 = vadd.f32 %v667_v21, %v410_v61  ;;  %v439_v9 = vmax.f32 %v419_v3, 0.0 }
 0x1c1   :  { %v778_v0 = vpop.f32.mrf.mxu1 }
 0x1c2   :  { %v422_v2 = vadd.f32 %v778_v0, %v667_v21  ;;  %803 = vmatprep.mubr.bf16.mxu0 %v445_v62  ;;  %v437_v7 = vmax.f32 %v411_v1, 0.0 }
 0x1c3   :  { %v413_v4 = vpop.f32.mrf.mxu1  ;;  %804 = vmatmul.mubr.bf16.gmra.mxu0 %v446_v63 }
 0x1c4   :  { %v414_v5 = vadd.f32 %v667_v21, %v413_v4  ;;  %v440_v6 = vmax.f32 %v422_v2, 0.0 }
 0x1c6   :  { %v438_v8 = vmax.f32 %v414_v5, 0.0  ;;  %v448_v11 = vpack.c.bf16 %v440_v6, %v439_v9 }
 0x1c8   :  { %v447_v10 = vpack.c.bf16 %v438_v8, %v437_v7 }
 0x1ca   :  { %807 = vmatprep.mubr.bf16.mxu0 %v447_v10 }
 0x1cb   :  { %808 = vmatmul.mubr.bf16.gmra.mxu0 %v448_v11 }
 0x273   :  { %v797_v13 = vpop.f32.mrf.mxu0 }
 0x274   :  { %v561_v14 = vadd.f32 %v797_v13, %v676_v12 }
 0x275   :  { %v552_v15 = vpop.f32.mrf.mxu0 }
 0x276   :  { %617 = vst [vmem:[#allocation5 + $0x10] sm:$0xff] %v561_v14  ;;  %v553_v16 = vadd.f32 %v676_v12, %v552_v15 }
 0x277   :  { %v798_v17 = vpop.f32.mrf.mxu0 }
 0x278   :  { %615 = vst [vmem:[#allocation5] sm:$0xff] %v553_v16  ;;  %v564_v18 = vadd.f32 %v798_v17, %v676_v12 }
 0x279   :  { %v555_v19 = vpop.f32.mrf.mxu0 }
 0x27a   :  { %618 = vst [vmem:[#allocation5 + $0x18] sm:$0xff] %v564_v18  ;;  %v556_v20 = vadd.f32 %v676_v12, %v555_v19 }
 0x27b   :  { %v801_v21 = vpop.f32.mrf.mxu0 }
 0x27c   :  { %616 = vst [vmem:[#allocation5 + $0x8] sm:$0xff] %v556_v20  ;;  %v577_v22 = vadd.f32 %v801_v21, %v676_v12 }
 0x27d   :  { %v568_v23 = vpop.f32.mrf.mxu0 }
 0x27e   :  { %621 = vst [vmem:[#allocation5 + $0x30] sm:$0xff] %v577_v22  ;;  %v569_v24 = vadd.f32 %v676_v12, %v568_v23 }
 0x27f   :  { %v802_v25 = vpop.f32.mrf.mxu0 }
 0x280   :  { %619 = vst [vmem:[#allocation5 + $0x20] sm:$0xff] %v569_v24  ;;  %v580_v26 = vadd.f32 %v802_v25, %v676_v12 }
 0x281   :  { %v571_v27 = vpop.f32.mrf.mxu0 }
 0x282   :  { %622 = vst [vmem:[#allocation5 + $0x38] sm:$0xff] %v580_v26  ;;  %v572_v28 = vadd.f32 %v676_v12, %v571_v27 }
 0x283   :  { %v805_v29 = vpop.f32.mrf.mxu0 }
 0x284   :  { %620 = vst [vmem:[#allocation5 + $0x28] sm:$0xff] %v572_v28  ;;  %v593_v30 = vadd.f32 %v805_v29, %v676_v12 }
 0x285   :  { %v584_v31 = vpop.f32.mrf.mxu0 }
 0x286   :  { %625 = vst [vmem:[#allocation5 + $0x50] sm:$0xff] %v593_v30  ;;  %v585_v32 = vadd.f32 %v676_v12, %v584_v31 }
 0x287   :  { %v806_v33 = vpop.f32.mrf.mxu0 }
 0x288   :  { %623 = vst [vmem:[#allocation5 + $0x40] sm:$0xff] %v585_v32  ;;  %v596_v34 = vadd.f32 %v806_v33, %v676_v12 }
 0x289   :  { %v587_v35 = vpop.f32.mrf.mxu0 }
 0x28a   :  { %626 = vst [vmem:[#allocation5 + $0x58] sm:$0xff] %v596_v34  ;;  %v588_v36 = vadd.f32 %v676_v12, %v587_v35 }
 0x28b   :  { %v809_v37 = vpop.f32.mrf.mxu0 }
 0x28c   :  { %624 = vst [vmem:[#allocation5 + $0x48] sm:$0xff] %v588_v36  ;;  %v609_v38 = vadd.f32 %v809_v37, %v676_v12 }
 0x28d   :  { %v600_v39 = vpop.f32.mrf.mxu0 }
 0x28e   :  { %629 = vst [vmem:[#allocation5 + $0x70] sm:$0xff] %v609_v38  ;;  %v601_v40 = vadd.f32 %v676_v12, %v600_v39 }
 0x28f   :  { %v810_v41 = vpop.f32.mrf.mxu0 }
 0x290   :  { %627 = vst [vmem:[#allocation5 + $0x60] sm:$0xff] %v601_v40  ;;  %v612_v42 = vadd.f32 %v810_v41, %v676_v12 }
 0x291   :  { %v603_v43 = vpop.f32.mrf.mxu0 }
 0x292   :  { %630 = vst [vmem:[#allocation5 + $0x78] sm:$0xff] %v612_v42  ;;  %v604_v44 = vadd.f32 %v676_v12, %v603_v43 }
 0x294   :  { %628 = vst [vmem:[#allocation5 + $0x68] sm:$0xff] %v604_v44 }
 0x295   :  { %874 = shalt.err (!%p871_p9)
}
 0x296   :  { %s891_s13 = smov 128   ;;  %s892_s14 = smov 8  }
 0x297   :  { %642 = dma.vmem_to_hbm [thread:$0]  %s637_s11, 2048, %s1005_s5, [#allocation4], %s891_s13, %s891_s13, %s892_s14  }
 0x298   :  { %885 = dma.done.wait [#allocation4], 2048  }
 0x299   :  { %886 = vsyncadd [#allocation4], 4294965248 }
 0x29a   :  { %646 = vsyncpa [#allocation3], 1 }
 0x29b   :  { %647 = vsyncpa [#allocation4], 1 }

// kernel: tpu_custom_call.1
= control target key start
LH: loop header
LB: loop body
LE: loop exit
PB: predicated region body
PF: predicated region fallthrough
CT: control target
= control target key end

     0   :  { %10 = vsyncpa [#allocation3], 0  ;;  %s1000_s0 = inlined_call_operand.vmem [shape: bf16[128,32], index: 0, kind: input, shape index: {}]   ;;  %s1001_s1 = inlined_call_operand.vmem [shape: bf16[32,128], index: 1, kind: input, shape index: {}]   ;;  %s1002_s2 = inlined_call_operand.vmem [shape: bf16[128,128], index: 2, kind: input, shape index: {}]   ;;  %s1003_s3 = inlined_call_operand.hbm [shape: bf16[128,128], index: 3, kind: input, shape index: {}]   ;;  %s1004_s4 = inlined_call_operand.vmem [shape: f32[3,128], index: 4, kind: input, shape index: {}]   ;;  %s1005_s5 = inlined_call_operand.hbm [shape: f32[128,128], index: 5, kind: output, shape index: {}]  }
   0x1   :  { %11 = vsyncpa [#allocation4], 0  ;;  %s887_s18 = smov [#allocation2]  }
   0x2   :  { %s23_s19 = sshll.u32 %s887_s18, 4  ;;  %s24_s19 = int_to_ptr.vmem [resolvable:$true] %s23_s19 }
   0x3   :  { %s851_s20 = scalar_lea.vmem %s24_s19, 1024  ;;  %p856_p1 = scmp.lt.s32.totalorder %s24_s19, %s24_s19 }
   0x4   :  { %p852_p0 = scmp.ne.s32.totalorder %s24_s19, %s851_s20  ;;  %p857_p2 = scmp.lt.s32.totalorder %s851_s20, %s851_s20 }
   0x6   :  { %p858_p3 = por %p857_p2, %p856_p1 }
   0x8   :  { %p859_p4 = pnand %p858_p3, %p852_p0 }
   0xa   :  { %862 = shalt.err (!%p859_p4)
}
   0xb   :  { %s888_s21 = smov 64   ;;  %s889_s22 = smov 4  }
   0xc   :  { %29 = dma.hbm_to_vmem [thread:$0]  %s1003_s3, 1024, %s24_s19, [#allocation3], %s888_s21, %s888_s21, %s889_s22  }
   0xd   :  { %883 = dma.done.wait [#allocation3], 1024  }
   0xe   :  { %884 = vsyncadd [#allocation3], 4294966272  ;;  %v817_v0 = vld [vmem:[%s1001_s1 + $0x8] sm:$0xff]   ;;  %v818_v1 = vld [vmem:[%s1001_s1] sm:$0xff]   ;;  %vm113_vm0 = vcmask 261120  }
   0xf   :  { %727 = vmatprep.subr.bf16.mxu0 %v817_v0  ;;  %v819_v2 = vld [vmem:[%s1000_s0] sm:$0xff]   ;;  %v820_v3 = vld [vmem:[%s1000_s0 + $0x8] sm:$0xff]   ;;  %v821_v4 = vld [vmem:[%s1000_s0 + $0x10] sm:$0xff]  }
  0x10   :  { %728 = vmatpush3.bf16.msra.mxu0 %v817_v0  ;;  %731 = vmatprep.mubr.msk.bf16.mxu0 %vm113_vm0, %v819_v2  ;;  %v827_v5 = vld [vmem:[%s1002_s2 + $0x38] sm:$0xff]   ;;  %v828_v6 = vld [vmem:[%s1002_s2 + $0x30] sm:$0xff]   ;;  %v823_v8 = vld [vmem:[%s1000_s0 + $0x20] sm:$0xff]  }
  0x11   :  { %729 = vmatprep.subr.bf16.mxu0 %v818_v1  ;;  %v822_v7 = vld [vmem:[%s1000_s0 + $0x18] sm:$0xff]   ;;  %747 = vmatprep.subr.bf16.mxu1 %v827_v5  ;;  %v829_v9 = vld [vmem:[%s1002_s2 + $0x28] sm:$0xff]   ;;  %v830_v10 = vld [vmem:[%s1002_s2 + $0x20] sm:$0xff]  }
  0x12   :  { %748 = vmatpush3.bf16.msra.mxu1 %v827_v5  ;;  %v824_v11 = vld [vmem:[%s1000_s0 + $0x28] sm:$0xff]   ;;  %v831_v12 = vld [vmem:[%s1002_s2 + $0x18] sm:$0xff]   ;;  %v825_v13 = vld [vmem:[%s1000_s0 + $0x30] sm:$0xff]  }
  0x13   :  { %749 = vmatprep.subr.bf16.mxu1 %v828_v6  ;;  %v826_v14 = vld [vmem:[%s1000_s0 + $0x38] sm:$0xff]   ;;  %v832_v15 = vld [vmem:[%s1002_s2 + $0x10] sm:$0xff]   ;;  %v833_v16 = vld [vmem:[%s1002_s2 + $0x8] sm:$0xff]  }
  0x14   :  { %730 = vmatpush3.bf16.msra.mxu0 %v818_v1  ;;  %v834_v17 = vld [vmem:[%s1002_s2] sm:$0xff]   ;;  %v835_v18 = vld [vmem:[#allocation2 + $0x38] sm:$0xff]   ;;  %v836_v19 = vld [vmem:[#allocation2 + $0x30] sm:$0xff]  }
  0x15   :  { %779 = vmatprep.subr.bf16.mxu0 %v835_v18  ;;  %v837_v20 = vld [vmem:[#allocation2 + $0x28] sm:$0xff]   ;;  %v838_v21 = vld [vmem:[#allocation2 + $0x20] sm:$0xff]   ;;  %v839_v22 = vld [vmem:[#allocation2 + $0x18] sm:$0xff]  }
  0x16   :  { %750 = vmatpush3.bf16.msra.mxu1 %v828_v6  ;;  %v648_v25 = vld [vmem:[%s1004_s4] ss:$0 sm:$0xff] }
  0x17   :  { %732 = vmatmul.mubr.msk.bf16.vlgmr.msra.gmra.mxu0 %vm113_vm0, %v820_v3  ;;  %751 = vmatprep.subr.bf16.mxu1 %v829_v9 }
  0x18   :  { %735 = vmatprep.mubr.msk.bf16.mxu0 %vm113_vm0, %v821_v4  ;;  %780 = vmatpush3.bf16.msra.mxu0 %v835_v18  ;;  %v842_v18 = vld [vmem:[#allocation2] sm:$0xff]  }
  0x19   :  { %781 = vmatprep.subr.bf16.mxu0 %v836_v19 }
  0x1a   :  { %752 = vmatpush3.bf16.msra.mxu1 %v829_v9 }
  0x1b   :  { %753 = vmatprep.subr.bf16.mxu1 %v830_v10 }
  0x1c   :  { %782 = vmatpush3.bf16.msra.mxu0 %v836_v19 }
  0x1d   :  { %783 = vmatprep.subr.bf16.mxu0 %v837_v20 }
  0x1e   :  { %754 = vmatpush3.bf16.msra.mxu1 %v830_v10 }
  0x1f   :  { %736 = vmatmul.mubr.msk.bf16.gmra.mxu0 %vm113_vm0, %v822_v7  ;;  %755 = vmatprep.subr.bf16.mxu1 %v831_v12 }
  0x20   :  { %739 = vmatprep.mubr.msk.bf16.mxu0 %vm113_vm0, %v823_v8  ;;  %784 = vmatpush3.bf16.msra.mxu0 %v837_v20 }
  0x21   :  { %785 = vmatprep.subr.bf16.mxu0 %v838_v21 }
  0x22   :  { %756 = vmatpush3.bf16.msra.mxu1 %v831_v12 }
  0x23   :  { %757 = vmatprep.subr.bf16.mxu1 %v832_v15 }
  0x24   :  { %786 = vmatpush3.bf16.msra.mxu0 %v838_v21  ;;  %v667_v21 = vld [vmem:[%s1004_s4 + $0x1] ss:$0 sm:$0xff] }
  0x25   :  { %787 = vmatprep.subr.bf16.mxu0 %v839_v22 }
  0x26   :  { %758 = vmatpush3.bf16.msra.mxu1 %v832_v15 }
  0x27   :  { %740 = vmatmul.mubr.msk.bf16.gmra.mxu0 %vm113_vm0, %v824_v11  ;;  %759 = vmatprep.subr.bf16.mxu1 %v833_v16 }
  0x28   :  { %743 = vmatprep.mubr.msk.bf16.mxu0 %vm113_vm0, %v825_v13  ;;  %788 = vmatpush3.bf16.msra.mxu0 %v839_v22 }
  0x2a   :  { %760 = vmatpush3.bf16.msra.mxu1 %v833_v16  ;;  %v840_v16 = vld [vmem:[#allocation2 + $0x10] sm:$0xff]  }
  0x2b   :  { %761 = vmatprep.subr.bf16.mxu1 %v834_v17  ;;  %789 = vmatprep.subr.bf16.mxu0 %v840_v16 }
  0x2c   :  { %790 = vmatpush3.bf16.msra.mxu0 %v840_v16 }
  0x2e   :  { %762 = vmatpush3.bf16.msra.mxu1 %v834_v17  ;;  %v841_v17 = vld [vmem:[#allocation2 + $0x8] sm:$0xff]  }
  0x2f   :  { %744 = vmatmul.mubr.msk.bf16.gmra.mxu0 %vm113_vm0, %v826_v14  ;;  %791 = vmatprep.subr.bf16.mxu0 %v841_v17 }
  0x30   :  { %792 = vmatpush3.bf16.msra.mxu0 %v841_v17 }
  0x31   :  { %793 = vmatprep.subr.bf16.mxu0 %v842_v18 }
  0x34   :  { %794 = vmatpush3.bf16.msra.mxu0 %v842_v18 }
  0xd7   :  { %v733_v23 = vpop.f32.mrf.mxu0 }
  0xd8   :  { %v181_v29 = vadd.f32 %v733_v23, %v648_v25 }
  0xd9   :  { %v172_v24 = vpop.f32.mrf.mxu0 }
  0xda   :  { %v173_v27 = vadd.f32 %v648_v25, %v172_v24  ;;  %v237_v36 = vmax.f32 %v181_v29, 0.0 }
  0xdb   :  { %v734_v26 = vpop.f32.mrf.mxu0 }
  0xdc   :  { %v184_v28 = vadd.f32 %v734_v26, %v648_v25  ;;  %v235_v34 = vmax.f32 %v173_v27, 0.0 }
  0xdd   :  { %v175_v30 = vpop.f32.mrf.mxu0 }
  0xde   :  { %v176_v31 = vadd.f32 %v648_v25, %v175_v30  ;;  %v238_v32 = vmax.f32 %v184_v28, 0.0 }
  0xdf   :  { %v737_v33 = vpop.f32.mrf.mxu0 }
  0xe0   :  { %v236_v35 = vmax.f32 %v176_v31, 0.0  ;;  %v252_v39 = vpack.c.bf16 %v238_v32, %v237_v36  ;;  %v197_v43 = vadd.f32 %v737_v33, %v648_v25 }
  0xe1   :  { %v188_v37 = vpop.f32.mrf.mxu0 }
  0xe2   :  { %v251_v38 = vpack.c.bf16 %v236_v35, %v235_v34  ;;  %v189_v41 = vadd.f32 %v648_v25, %v188_v37  ;;  %v241_v50 = vmax.f32 %v197_v43, 0.0 }
  0xe3   :  { %v738_v40 = vpop.f32.mrf.mxu0 }
  0xe4   :  { %v200_v42 = vadd.f32 %v738_v40, %v648_v25  ;;  %763 = vmatprep.mubr.bf16.mxu1 %v251_v38  ;;  %v239_v48 = vmax.f32 %v189_v41, 0.0 }
  0xe5   :  { %v191_v44 = vpop.f32.mrf.mxu0  ;;  %764 = vmatmul.mubr.bf16.vlgmr.msra.gmra.mxu1 %v252_v39 }
  0xe6   :  { %v192_v45 = vadd.f32 %v648_v25, %v191_v44  ;;  %v242_v46 = vmax.f32 %v200_v42, 0.0 }
  0xe7   :  { %v741_v47 = vpop.f32.mrf.mxu0 }
  0xe8   :  { %v240_v49 = vmax.f32 %v192_v45, 0.0  ;;  %v254_v53 = vpack.c.bf16 %v242_v46, %v241_v50  ;;  %v213_v57 = vadd.f32 %v741_v47, %v648_v25 }
  0xe9   :  { %v204_v51 = vpop.f32.mrf.mxu0 }
  0xea   :  { %v253_v52 = vpack.c.bf16 %v240_v49, %v239_v48  ;;  %v205_v55 = vadd.f32 %v648_v25, %v204_v51  ;;  %v245_v0 = vmax.f32 %v213_v57, 0.0 }
  0xeb   :  { %v742_v54 = vpop.f32.mrf.mxu0 }
  0xec   :  { %v216_v56 = vadd.f32 %v742_v54, %v648_v25  ;;  %767 = vmatprep.mubr.bf16.mxu1 %v253_v52  ;;  %v243_v62 = vmax.f32 %v205_v55, 0.0 }
  0xed   :  { %v207_v58 = vpop.f32.mrf.mxu0  ;;  %768 = vmatmul.mubr.bf16.gmra.mxu1 %v254_v53 }
  0xee   :  { %v208_v59 = vadd.f32 %v648_v25, %v207_v58  ;;  %v246_v60 = vmax.f32 %v216_v56, 0.0 }
  0xef   :  { %v745_v61 = vpop.f32.mrf.mxu0 }
  0xf0   :  { %v244_v63 = vmax.f32 %v208_v59, 0.0  ;;  %v256_v3 = vpack.c.bf16 %v246_v60, %v245_v0  ;;  %v229_v7 = vadd.f32 %v745_v61, %v648_v25 }
  0xf1   :  { %v220_v1 = vpop.f32.mrf.mxu0 }
  0xf2   :  { %v255_v2 = vpack.c.bf16 %v244_v63, %v243_v62  ;;  %v221_v5 = vadd.f32 %v648_v25, %v220_v1  ;;  %v249_v13 = vmax.f32 %v229_v7, 0.0 }
  0xf3   :  { %v746_v4 = vpop.f32.mrf.mxu0 }
  0xf4   :  { %v232_v6 = vadd.f32 %v746_v4, %v648_v25  ;;  %771 = vmatprep.mubr.bf16.mxu1 %v255_v2  ;;  %v247_v11 = vmax.f32 %v221_v5, 0.0 }
  0xf5   :  { %v223_v8 = vpop.f32.mrf.mxu0  ;;  %772 = vmatmul.mubr.bf16.gmra.mxu1 %v256_v3 }
  0xf6   :  { %v224_v9 = vadd.f32 %v648_v25, %v223_v8  ;;  %v250_v10 = vmax.f32 %v232_v6, 0.0 }
  0xf8   :  { %v248_v12 = vmax.f32 %v224_v9, 0.0  ;;  %v258_v15 = vpack.c.bf16 %v250_v10, %v249_v13 }
  0xfa   :  { %v257_v14 = vpack.c.bf16 %v248_v12, %v247_v11  ;;  %v676_v12 = vld [vmem:[%s1004_s4 + $0x2] ss:$0 sm:$0xff]  ;;  %s890_s4 = smov [#allocation5]  }
  0xfb   :  { %s636_s11 = sshll.u32 %s890_s4, 4  ;;  %s637_s11 = int_to_ptr.vmem [resolvable:$true] %s636_s11 }
  0xfc   :  { %775 = vmatprep.mubr.bf16.mxu1 %v257_v14  ;;  %s863_s12 = scalar_lea.vmem %s637_s11, 2048  ;;  %p868_p6 = scmp.lt.s32.totalorder %s637_s11, %s637_s11 }
  0xfd   :  { %776 = vmatmul.mubr.bf16.gmra.mxu1 %v258_v15  ;;  %p864_p5 = scmp.ne.s32.totalorder %s637_s11, %s863_s12  ;;  %p869_p7 = scmp.lt.s32.totalorder %s863_s12, %s863_s12 }
  0xff   :  { %p870_p8 = por %p869_p7, %p868_p6 }
 0x101   :  { %p871_p9 = pnand %p870_p8, %p864_p5 }
 0x1a5   :  { %v765_v19 = vpop.f32.mrf.mxu1 }
 0x1a6   :  { %v371_v25 = vadd.f32 %v765_v19, %v667_v21 }
 0x1a7   :  { %v362_v20 = vpop.f32.mrf.mxu1 }
 0x1a8   :  { %v363_v23 = vadd.f32 %v667_v21, %v362_v20  ;;  %v427_v32 = vmax.f32 %v371_v25, 0.0 }
 0x1a9   :  { %v766_v22 = vpop.f32.mrf.mxu1 }
 0x1aa   :  { %v374_v24 = vadd.f32 %v766_v22, %v667_v21  ;;  %v425_v30 = vmax.f32 %v363_v23, 0.0 }
 0x1ab   :  { %v365_v26 = vpop.f32.mrf.mxu1 }
 0x1ac   :  { %v366_v27 = vadd.f32 %v667_v21, %v365_v26  ;;  %v428_v28 = vmax.f32 %v374_v24, 0.0 }
 0x1ad   :  { %v769_v29 = vpop.f32.mrf.mxu1 }
 0x1ae   :  { %v426_v31 = vmax.f32 %v366_v27, 0.0  ;;  %v442_v35 = vpack.c.bf16 %v428_v28, %v427_v32  ;;  %v387_v39 = vadd.f32 %v769_v29, %v667_v21 }
 0x1af   :  { %v378_v33 = vpop.f32.mrf.mxu1 }
 0x1b0   :  { %v441_v34 = vpack.c.bf16 %v426_v31, %v425_v30  ;;  %v379_v37 = vadd.f32 %v667_v21, %v378_v33  ;;  %v431_v46 = vmax.f32 %v387_v39, 0.0 }
 0x1b1   :  { %v770_v36 = vpop.f32.mrf.mxu1 }
 0x1b2   :  { %v390_v38 = vadd.f32 %v770_v36, %v667_v21  ;;  %795 = vmatprep.mubr.bf16.mxu0 %v441_v34  ;;  %v429_v44 = vmax.f32 %v379_v37, 0.0 }
 0x1b3   :  { %v381_v40 = vpop.f32.mrf.mxu1  ;;  %796 = vmatmul.mubr.bf16.vlgmr.msra.gmra.mxu0 %v442_v35 }
 0x1b4   :  { %v382_v41 = vadd.f32 %v667_v21, %v381_v40  ;;  %v432_v42 = vmax.f32 %v390_v38, 0.0 }
 0x1b5   :  { %v773_v43 = vpop.f32.mrf.mxu1 }
 0x1b6   :  { %v430_v45 = vmax.f32 %v382_v41, 0.0  ;;  %v444_v49 = vpack.c.bf16 %v432_v42, %v431_v46  ;;  %v403_v53 = vadd.f32 %v773_v43, %v667_v21 }
 0x1b7   :  { %v394_v47 = vpop.f32.mrf.mxu1 }
 0x1b8   :  { %v443_v48 = vpack.c.bf16 %v430_v45, %v429_v44  ;;  %v395_v51 = vadd.f32 %v667_v21, %v394_v47  ;;  %v435_v60 = vmax.f32 %v403_v53, 0.0 }
 0x1b9   :  { %v774_v50 = vpop.f32.mrf.mxu1 }
 0x1ba   :  { %v406_v52 = vadd.f32 %v774_v50, %v667_v21  ;;  %799 = vmatprep.mubr.bf16.mxu0 %v443_v48  ;;  %v433_v58 = vmax.f32 %v395_v51, 0.0 }
 0x1bb   :  { %v397_v54 = vpop.f32.mrf.mxu1  ;;  %800 = vmatmul.mubr.bf16.gmra.mxu0 %v444_v49 }
 0x1bc   :  { %v398_v55 = vadd.f32 %v667_v21, %v397_v54  ;;  %v436_v56 = vmax.f32 %v406_v52, 0.0 }
 0x1bd   :  { %v777_v57 = vpop.f32.mrf.mxu1 }
 0x1be   :  { %v434_v59 = vmax.f32 %v398_v55, 0.0  ;;  %v446_v63 = vpack.c.bf16 %v436_v56, %v435_v60  ;;  %v419_v3 = vadd.f32 %v777_v57, %v667_v21 }
 0x1bf   :  { %v410_v61 = vpop.f32.mrf.mxu1 }
 0x1c0   :  { %v445_v62 = vpack.c.bf16 %v434_v59, %v433_v58  ;;  %v411_v1 = vadd.f32 %v667_v21, %v410_v61  ;;  %v439_v9 = vmax.f32 %v419_v3, 0.0 }
 0x1c1   :  { %v778_v0 = vpop.f32.mrf.mxu1 }
 0x1c2   :  { %v422_v2 = vadd.f32 %v778_v0, %v667_v21  ;;  %803 = vmatprep.mubr.bf16.mxu0 %v445_v62  ;;  %v437_v7 = vmax.f32 %v411_v1, 0.0 }
 0x1c3   :  { %v413_v4 = vpop.f32.mrf.mxu1  ;;  %804 = vmatmul.mubr.bf16.gmra.mxu0 %v446_v63 }
 0x1c4   :  { %v414_v5 = vadd.f32 %v667_v21, %v413_v4  ;;  %v440_v6 = vmax.f32 %v422_v2, 0.0 }
 0x1c6   :  { %v438_v8 = vmax.f32 %v414_v5, 0.0  ;;  %v448_v11 = vpack.c.bf16 %v440_v6, %v439_v9 }
 0x1c8   :  { %v447_v10 = vpack.c.bf16 %v438_v8, %v437_v7 }
 0x1ca   :  { %807 = vmatprep.mubr.bf16.mxu0 %v447_v10 }
 0x1cb   :  { %808 = vmatmul.mubr.bf16.gmra.mxu0 %v448_v11 }
 0x273   :  { %v797_v13 = vpop.f32.mrf.mxu0 }
 0x274   :  { %v561_v14 = vadd.f32 %v797_v13, %v676_v12 }
 0x275   :  { %v552_v15 = vpop.f32.mrf.mxu0 }
 0x276   :  { %617 = vst [vmem:[#allocation5 + $0x10] sm:$0xff] %v561_v14  ;;  %v553_v16 = vadd.f32 %v676_v12, %v552_v15 }
 0x277   :  { %v798_v17 = vpop.f32.mrf.mxu0 }
 0x278   :  { %615 = vst [vmem:[#allocation5] sm:$0xff] %v553_v16  ;;  %v564_v18 = vadd.f32 %v798_v17, %v676_v12 }
 0x279   :  { %v555_v19 = vpop.f32.mrf.mxu0 }
 0x27a   :  { %618 = vst [vmem:[#allocation5 + $0x18] sm:$0xff] %v564_v18  ;;  %v556_v20 = vadd.f32 %v676_v12, %v555_v19 }
 0x27b   :  { %v801_v21 = vpop.f32.mrf.mxu0 }
 0x27c   :  { %616 = vst [vmem:[#allocation5 + $0x8] sm:$0xff] %v556_v20  ;;  %v577_v22 = vadd.f32 %v801_v21, %v676_v12 }
 0x27d   :  { %v568_v23 = vpop.f32.mrf.mxu0 }
 0x27e   :  { %621 = vst [vmem:[#allocation5 + $0x30] sm:$0xff] %v577_v22  ;;  %v569_v24 = vadd.f32 %v676_v12, %v568_v23 }
 0x27f   :  { %v802_v25 = vpop.f32.mrf.mxu0 }
 0x280   :  { %619 = vst [vmem:[#allocation5 + $0x20] sm:$0xff] %v569_v24  ;;  %v580_v26 = vadd.f32 %v802_v25, %v676_v12 }
 0x281   :  { %v571_v27 = vpop.f32.mrf.mxu0 }
 0x282   :  { %622 = vst [vmem:[#allocation5 + $0x38] sm:$0xff] %v580_v26  ;;  %v572_v28 = vadd.f32 %v676_v12, %v571_v27 }
 0x283   :  { %v805_v29 = vpop.f32.mrf.mxu0 }
 0x284   :  { %620 = vst [vmem:[#allocation5 + $0x28] sm:$0xff] %v572_v28  ;;  %v593_v30 = vadd.f32 %v805_v29, %v676_v12 }
 0x285   :  { %v584_v31 = vpop.f32.mrf.mxu0 }
 0x286   :  { %625 = vst [vmem:[#allocation5 + $0x50] sm:$0xff] %v593_v30  ;;  %v585_v32 = vadd.f32 %v676_v12, %v584_v31 }
 0x287   :  { %v806_v33 = vpop.f32.mrf.mxu0 }
 0x288   :  { %623 = vst [vmem:[#allocation5 + $0x40] sm:$0xff] %v585_v32  ;;  %v596_v34 = vadd.f32 %v806_v33, %v676_v12 }
 0x289   :  { %v587_v35 = vpop.f32.mrf.mxu0 }
 0x28a   :  { %626 = vst [vmem:[#allocation5 + $0x58] sm:$0xff] %v596_v34  ;;  %v588_v36 = vadd.f32 %v676_v12, %v587_v35 }
 0x28b   :  { %v809_v37 = vpop.f32.mrf.mxu0 }
 0x28c   :  { %624 = vst [vmem:[#allocation5 + $0x48] sm:$0xff] %v588_v36  ;;  %v609_v38 = vadd.f32 %v809_v37, %v676_v12 }
 0x28d   :  { %v600_v39 = vpop.f32.mrf.mxu0 }
 0x28e   :  { %629 = vst [vmem:[#allocation5 + $0x70] sm:$0xff] %v609_v38  ;;  %v601_v40 = vadd.f32 %v676_v12, %v600_v39 }
 0x28f   :  { %v810_v41 = vpop.f32.mrf.mxu0 }
 0x290   :  { %627 = vst [vmem:[#allocation5 + $0x60] sm:$0xff] %v601_v40  ;;  %v612_v42 = vadd.f32 %v810_v41, %v676_v12 }
 0x291   :  { %v603_v43 = vpop.f32.mrf.mxu0 }
 0x292   :  { %630 = vst [vmem:[#allocation5 + $0x78] sm:$0xff] %v612_v42  ;;  %v604_v44 = vadd.f32 %v676_v12, %v603_v43 }
 0x294   :  { %628 = vst [vmem:[#allocation5 + $0x68] sm:$0xff] %v604_v44 }
 0x295   :  { %874 = shalt.err (!%p871_p9)
}
 0x296   :  { %s891_s13 = smov 128   ;;  %s892_s14 = smov 8  }
 0x297   :  { %642 = dma.vmem_to_hbm [thread:$0]  %s637_s11, 2048, %s1005_s5, [#allocation4], %s891_s13, %s891_s13, %s892_s14  }
 0x298   :  { %885 = dma.done.wait [#allocation4], 2048  }
 0x299   :  { %886 = vsyncadd [#allocation4], 4294965248 }
 0x29a   :  { %646 = vsyncpa [#allocation3], 1 }
 0x29b   :  { %647 = vsyncpa [#allocation4], 1 }

</bundles_post_ra>
